<compile_context>
chip_gen: v6e
topology: v6e:2x2x1
jax: 0.10.0
libtpu: 0.0.40
codegen_flags: <defaults>
</compile_context>

<pallas_src>
import functools

import jax
import jax.numpy as jnp
from jax.experimental import pallas as pl
from jax.experimental.pallas import tpu as pltpu


_LANE = 128
_VMEM_FALLBACK = 64 * 1024 * 1024       # v7x per-TC VMEM: the smallest across generations


def _round_up(x, m):
    return ((x + m - 1) // m) * m


def _vmem_budget_bytes():
    """Generation-aware VMEM budget (v5e/v6e: 128 MiB physical, v7x: 64 MiB)."""
    try:
        cap = int(pltpu.get_tpu_info().vmem_capacity_bytes)
    except Exception:                    # query unavailable -> assume the smallest (v7x)
        cap = _VMEM_FALLBACK
    if cap <= 0:
        cap = _VMEM_FALLBACK
    # 3/4 of capacity leaves headroom for compiler scratch; hard cap at 96 MiB.
    return min((cap * 3) // 4, 96 * 1024 * 1024)


def _choose_k_tile(f128, h_cols, a_pad, budget_bytes, batch_hint=32):
    """Largest K tile (multiple of 128) whose double-buffered streams fit VMEM."""
    # Residents (conservatively assume they are double-buffered too):
    #   w2 half (bf16) + b1/scale/b2 (f32) + acc scratch + output block.
    resident = 2 * (h_cols * a_pad * 2 + (2 * h_cols + a_pad) * 4
                    + batch_hint * h_cols * 4 + batch_hint * a_pad * 4)
    # Streamed bytes per K column, double-buffered: int8 w1 row-slice + f32 enc column.
    per_col = 2 * (h_cols * 1 + batch_hint * 4)
    avail = max(budget_bytes - resident, per_col * _LANE)
    tk = (avail // per_col) // _LANE * _LANE
    return int(max(_LANE, min(tk, f128)))


# ----------------------------------------------------------------------------
# Pallas kernel: fused fc1 (int8 weights, K-tiled, f32 accum, H-sharded)
#                -> dequant + bias + ReLU -> fc2 (lane-padded partial output)
# ----------------------------------------------------------------------------
def qhead_kernel(enc_ref, w1q_ref, s1_ref, b1_ref, w2_ref, b2_ref, out_ref,
                 acc_ref, *, b2_frac):
    # enc_ref: (B, tk) f32            w1q_ref: (tk, Hh) int8 (emb folded, per-col quant)
    # s1_ref/b1_ref: (1, Hh) f32      w2_ref: (Hh, A_pad) bf16   b2_ref: (1, A_pad) f32
    # out_ref: (B, A_pad) f32 (one H-shard partial)    acc_ref: (B, Hh) f32 scratch
    k = pl.program_id(1)

    @pl.when(k == 0)
    def _():
        acc_ref[...] = jnp.zeros_like(acc_ref)

    # Weight-only int8 -> integer-exact bf16 on the VPU (free in a DMA-bound kernel);
    # the MXU only ever sees bf16 x bf16 with f32 accumulation (works on every gen).
    a = enc_ref[...].astype(jnp.bfloat16)
    w = w1q_ref[...].astype(jnp.float32).astype(jnp.bfloat16)
    acc_ref[...] += jnp.dot(a, w, preferred_element_type=jnp.float32)

    @pl.when(k == pl.num_programs(1) - 1)
    def _():
        # Per-output-channel dequant scale + bias + ReLU in f32
        # (v5e VPU has no bf16 elementwise path).
        h = jnp.maximum(acc_ref[...] * s1_ref[...] + b1_ref[...], 0.0)
        q = jnp.dot(h.astype(jnp.bfloat16), w2_ref[...],
                    preferred_element_type=jnp.float32)
        # Each H-shard adds its share of b2 so the wrapper's sum over shards is exact.
        out_ref[...] = (q + b2_frac * b2_ref[...]).astype(out_ref.dtype)


def q_head_pallas(enc, w1_q, w1_scale, b1, w2, b2, *, tk, n_shards=2):
    B, F_pad = enc.shape
    F_w, H = w1_q.shape
    assert F_w == F_pad and F_pad % tk == 0, (F_w, F_pad, tk)
    assert H % n_shards == 0, (H, n_shards)
    Hh = H // n_shards
    A_pad = w2.shape[1]
    n_k = F_pad // tk

    flops = 2 * B * F_pad * H + 2 * B * H * A_pad
    bytes_accessed = (enc.size * 4 + w1_q.size + w1_scale.size * 4 + b1.size * 4
                      + w2.size * 2 + b2.size * 4 + n_shards * B * A_pad * 4)

    kernel = functools.partial(qhead_kernel, b2_frac=1.0 / n_shards)

    return pl.pallas_call(
        kernel,
        out_shape=jax.ShapeDtypeStruct((n_shards, B, A_pad), jnp.float32),
        grid_spec=pltpu.PrefetchScalarGridSpec(
            num_scalar_prefetch=0,
            grid=(n_shards, n_k),                    # (parallel H-shard, K reduction)
            in_specs=[
                pl.BlockSpec((B, tk),     lambda c, k: (0, k)),   # enc   f32, K-tiled
                pl.BlockSpec((tk, Hh),    lambda c, k: (k, c)),   # w1    int8, K x H tiled
                pl.BlockSpec((1, Hh),     lambda c, k: (0, c)),   # w1 per-col scale
                pl.BlockSpec((1, Hh),     lambda c, k: (0, c)),   # b1
                pl.BlockSpec((Hh, A_pad), lambda c, k: (c, 0)),   # w2    bf16, H-sharded rows
                pl.BlockSpec((1, A_pad),  lambda c, k: (0, 0)),   # b2
            ],
            out_specs=pl.BlockSpec((None, B, A_pad), lambda c, k: (c, 0, 0)),
            scratch_shapes=[pltpu.VMEM((B, Hh), jnp.float32)],
        ),
        compiler_params=pltpu.CompilerParams(
            dimension_semantics=("parallel", "arbitrary"),
            vmem_limit_bytes=_vmem_budget_bytes(),
        ),
        cost_estimate=pl.CostEstimate(
            flops=flops, transcendentals=0, bytes_accessed=bytes_accessed),
    )(enc, w1_q, w1_scale, b1, w2, b2)


# ----------------------------------------------------------------------------
# Stand-in encoder (glue, plain JAX)
# ----------------------------------------------------------------------------
# TODO(synk): ModifiedResNet18 is not defined in the provided source; this is a
# deterministic conv3x3(stride=2) + GroupNorm + ReLU stand-in, not the real encoder.
def standin_encoder(state, conv_w, conv_b, gn_gamma, gn_beta, n_groups):
    y = jax.lax.conv_general_dilated(
        state, conv_w, window_strides=(2, 2), padding=((1, 1), (1, 1)),
        dimension_numbers=("NCHW", "OIHW", "NCHW"))
    y = y + conv_b[None, :, None, None]
    B, C, H, W = y.shape
    yg = y.reshape(B, n_groups, C // n_groups, H, W)
    mean = yg.mean(axis=(2, 3, 4), keepdims=True)
    var = yg.var(axis=(2, 3, 4), keepdims=True)
    yn = (yg - mean) / jnp.sqrt(var + 1e-5)
    y = yn.reshape(B, C, H, W) * gn_gamma[None, :, None, None] + gn_beta[None, :, None, None]
    return jnp.maximum(y, 0.0)


# ----------------------------------------------------------------------------
# One-time inference parameter prep: fold spatial emb into w1, int8-quantise w1
# (per-output-channel), zero-pad F to a VMEM-budgeted K tile, lane-pad actions.
# ----------------------------------------------------------------------------
def prepare_inference_params(params, *, n_shards=2, batch_hint=32):
    w1 = params["w1"].astype(jnp.float32)                               # (F, 512)
    F, H = w1.shape
    assert H % n_shards == 0

    # Fold the learned spatial embedding: (enc * emb) @ W1 == enc @ (diag(emb) @ W1).
    emb_col = params["spatial_emb"].reshape(-1, 1).astype(jnp.float32)  # (F, 1)
    w1_folded = emb_col * w1

    # fc2 lane padding (lane-dense output stores; wrapper slices back to n_actions).
    w2 = params["w2"].astype(jnp.float32)                               # (512, A)
    H_fc, A = w2.shape
    assert H_fc == H
    A_pad = _round_up(A, _LANE)

    # Adaptive K tile against a generation-aware VMEM budget; zero-pad F so every
    # BlockSpec dim is (8,128)-legal and F_pad % tk == 0 for any encoder size.
    budget = _vmem_budget_bytes()
    f128 = _round_up(F, _LANE)
    tk = _choose_k_tile(f128, H // n_shards, A_pad, budget, batch_hint)
    n_k = -(-f128 // tk)
    F_pad = n_k * tk
    if F_pad > F:
        w1_folded = jnp.pad(w1_folded, ((0, F_pad - F), (0, 0)))

    # Weight-only int8 with per-output-channel scale (the dominant HBM stream halved).
    amax = jnp.max(jnp.abs(w1_folded), axis=0, keepdims=True)           # (1, 512)
    w1_scale = (jnp.maximum(amax, 1e-12) / 127.0).astype(jnp.float32)
    w1_q = jnp.clip(jnp.round(w1_folded / w1_scale), -127.0, 127.0).astype(jnp.int8)

    w2_pad = jnp.zeros((H, A_pad), jnp.float32).at[:, :A].set(w2).astype(jnp.bfloat16)
    b2_pad = jnp.zeros((1, A_pad), jnp.float32).at[0, :A].set(
        params["b2"].astype(jnp.float32).reshape(-1))

    return {
        "conv_w": params["conv_w"], "conv_b": params["conv_b"],
        "gn_gamma": params["gn_gamma"], "gn_beta": params["gn_beta"],
        "n_groups": params["n_groups"],
        "w1_q": w1_q, "w1_scale": w1_scale,
        "b1": params["b1"].astype(jnp.float32).reshape(1, -1),
        "w2": w2_pad, "b2": b2_pad,
        "n_actions": A, "F_pad": F_pad, "tk": tk, "n_shards": n_shards,
    }


# ----------------------------------------------------------------------------
# ScaledQNetwork forward (inference)
# ----------------------------------------------------------------------------
def scaled_q_network_forward(state, prep):
    enc = standin_encoder(state, prep["conv_w"], prep["conv_b"],
                          prep["gn_gamma"], prep["gn_beta"], prep["n_groups"])
    B = enc.shape[0]
    enc_flat = enc.reshape(B, -1)                   # .view(batch, -1); stays f32 (bf16 cast is in-kernel)
    F = enc_flat.shape[1]
    if prep["F_pad"] > F:
        enc_flat = jnp.pad(enc_flat, ((0, 0), (0, prep["F_pad"] - F)))
    partials = q_head_pallas(enc_flat, prep["w1_q"], prep["w1_scale"], prep["b1"],
                             prep["w2"], prep["b2"],
                             tk=prep["tk"], n_shards=prep["n_shards"])
    q = jnp.sum(partials, axis=0)                   # combine H-shard partials (tiny XLA add)
    return q[:, :prep["n_actions"]]


if __name__ == "__main__":
    key = jax.random.PRNGKey(0)
    ks = jax.random.split(key, 10)

    # Small shapes consistent with the module: input_dims = (4, 16, 16), batch = 2.
    B, C_in, H_img, W_img = 2, 4, 16, 16
    C_enc, n_groups = 16, 4
    n_actions = 6
    H_enc, W_enc = H_img // 2, W_img // 2           # conv stride 2
    F = C_enc * H_enc * W_enc                       # fc_input_dims = prod(encoder_output_dims)

    params = {
        "conv_w": 0.1 * jax.random.normal(ks[0], (C_enc, C_in, 3, 3), jnp.float32),
        "conv_b": 0.1 * jax.random.normal(ks[1], (C_enc,), jnp.float32),
        "gn_gamma": jnp.ones((C_enc,), jnp.float32),
        "gn_beta": jnp.zeros((C_enc,), jnp.float32),
        "n_groups": n_groups,
        # nn.Parameter(torch.randn(encoder_output_dims)); encoder_output_dims = (1, C', H', W')
        "spatial_emb": jax.random.normal(ks[2], (1, C_enc, H_enc, W_enc), jnp.float32),
        # fc1: Linear(F, 512); fc2: Linear(512, n_actions); stored (in, out) for x @ W
        "w1": 0.05 * jax.random.normal(ks[3], (F, 512), jnp.float32),
        "b1": 0.05 * jax.random.normal(ks[4], (1, 512), jnp.float32),
        "w2": 0.05 * jax.random.normal(ks[5], (512, n_actions), jnp.float32),
        "b2": 0.05 * jax.random.normal(ks[6], (1, n_actions), jnp.float32),
    }

    state = jax.random.normal(ks[7], (B, C_in, H_img, W_img), jnp.float32)

    prep = prepare_inference_params(params)
    actions = scaled_q_network_forward(state, prep)
    actions = jax.block_until_ready(actions)
    assert actions.shape == (B, n_actions), actions.shape

    # --- references -----------------------------------------------------------
    enc = standin_encoder(state, params["conv_w"], params["conv_b"],
                          params["gn_gamma"], params["gn_beta"], n_groups)
    enc_flat = enc.reshape(B, -1)

    # (a) Exact f32 math of the original module (loose tol: int8 w1 + bf16 activations).
    ref_f32 = (jnp.maximum(enc_flat * params["spatial_emb"].reshape(1, -1)
                           @ params["w1"] + params["b1"], 0.0)
               @ params["w2"] + params["b2"])
    assert jnp.allclose(actions, ref_f32, atol=1e-1, rtol=1e-1), \
        float(jnp.max(jnp.abs(actions - ref_f32)))

    # (b) Tight reference replaying the exact quantised / padded kernel math.
    enc_pad = enc_flat
    if prep["F_pad"] > enc_pad.shape[1]:
        enc_pad = jnp.pad(enc_pad, ((0, 0), (0, prep["F_pad"] - enc_pad.shape[1])))
    acc = jnp.dot(enc_pad.astype(jnp.bfloat16),
                  prep["w1_q"].astype(jnp.float32).astype(jnp.bfloat16),
                  preferred_element_type=jnp.float32)
    h = jnp.maximum(acc * prep["w1_scale"] + prep["b1"], 0.0)
    ref_q = (jnp.dot(h.astype(jnp.bfloat16), prep["w2"],
                     preferred_element_type=jnp.float32) + prep["b2"])[:, :n_actions]
    assert jnp.allclose(actions, ref_q, atol=5e-3, rtol=5e-3), \
        float(jnp.max(jnp.abs(actions - ref_q)))

    print("KERNEL_OK")
</pallas_src>

<mosaic_0001>
module attributes {stable_mosaic.version = 11 : i64} {
  func.func @qhead_kernel(%arg0: i32, %arg1: i32, %arg2: memref<2x1024xf32, #tpu.memory_space<vmem>>, %arg3: memref<1024x256xi8, #tpu.memory_space<vmem>>, %arg4: memref<1x256xf32, #tpu.memory_space<vmem>>, %arg5: memref<1x256xf32, #tpu.memory_space<vmem>>, %arg6: memref<256x128xbf16, #tpu.memory_space<vmem>>, %arg7: memref<1x128xf32, #tpu.memory_space<vmem>>, %arg8: memref<1x2x128xf32, #tpu.memory_space<vmem>>, %arg9: memref<2x256xf32, #tpu.memory_space<vmem>>) attributes {dimension_semantics = [#tpu.dimension_semantics<parallel>, #tpu.dimension_semantics<arbitrary>], iteration_bounds = array<i64: 2, 1>, scalar_prefetch = 0 : i64, scratch_operands = 1 : i64, tpu.core_type = #tpu.core_type<tc>, window_params = [{transform_indices = @transform_0, window_bounds = array<i64: 2, 1024>}, {transform_indices = @transform_1, window_bounds = array<i64: 1024, 256>}, {transform_indices = @transform_2, window_bounds = array<i64: 1, 256>}, {transform_indices = @transform_3, window_bounds = array<i64: 1, 256>}, {transform_indices = @transform_4, window_bounds = array<i64: 256, 128>}, {pipeline_mode = #tpu.pipeline_mode<synchronous>, transform_indices = @transform_5, window_bounds = array<i64: 1, 128>}, {transform_indices = @transform_6, window_bounds = array<i64: 1, 2, 128>}]} {
    %c0_i32 = arith.constant 0 : i32
    %0 = arith.cmpi eq, %arg1, %c0_i32 : i32
    %1 = arith.extui %0 : i1 to i32
    %c0_i32_0 = arith.constant 0 : i32
    %2 = arith.cmpi ne, %1, %c0_i32_0 : i32
    scf.if %2 {
      %cst_10 = arith.constant 0.000000e+00 : f32
      %15 = vector.broadcast %cst_10 : f32 to vector<2x256xf32>
      %c0_11 = arith.constant 0 : index
      %c0_12 = arith.constant 0 : index
      %16 = vector.load %arg9[%c0_11, %c0_12] : memref<2x256xf32, #tpu.memory_space<vmem>>, vector<2x256xf32>
      tpu.vector_store %arg9[%c0_11, %c0_12], %15 {strides = array<i32>} : memref<2x256xf32, #tpu.memory_space<vmem>>, vector<2x256xf32>,
    } else {
    }
    %c0 = arith.constant 0 : index
    %c0_1 = arith.constant 0 : index
    %3 = vector.load %arg2[%c0, %c0_1] : memref<2x1024xf32, #tpu.memory_space<vmem>>, vector<2x1024xf32>
    %4 = arith.truncf %3 : vector<2x1024xf32> to vector<2x1024xbf16>
    %c0_2 = arith.constant 0 : index
    %c0_3 = arith.constant 0 : index
    %5 = vector.load %arg3[%c0_2, %c0_3] : memref<1024x256xi8, #tpu.memory_space<vmem>>, vector<1024x256xi8>
    %6 = arith.sitofp %5 : vector<1024x256xi8> to vector<1024x256xf32>
    %7 = arith.truncf %6 : vector<1024x256xf32> to vector<1024x256xbf16>
    %c0_4 = arith.constant 0 : index
    %c0_5 = arith.constant 0 : index
    %8 = vector.load %arg9[%c0_4, %c0_5] : memref<2x256xf32, #tpu.memory_space<vmem>>, vector<2x256xf32>
    %cst = arith.constant dense<0.000000e+00> : vector<2x256xf32>
    %9 = tpu.matmul %4, %7, %cst {dimension_numbers = #tpu.dot_dimension_numbers<[1], [0], [0], [1], [0, 0, 1, 1], [], []>} : vector<2x1024xbf16>, vector<1024x256xbf16>, vector<2x256xf32> -> vector<2x256xf32>
    %10 = arith.addf %8, %9 : vector<2x256xf32>
    %c0_6 = arith.constant 0 : index
    %c0_7 = arith.constant 0 : index
    %11 = vector.load %arg9[%c0_6, %c0_7] : memref<2x256xf32, #tpu.memory_space<vmem>>, vector<2x256xf32>
    tpu.vector_store %arg9[%c0_6, %c0_7], %10 {strides = array<i32>} : memref<2x256xf32, #tpu.memory_space<vmem>>, vector<2x256xf32>,
    %c0_i32_8 = arith.constant 0 : i32
    %12 = arith.cmpi eq, %arg1, %c0_i32_8 : i32
    %13 = arith.extui %12 : i1 to i32
    %c0_i32_9 = arith.constant 0 : i32
    %14 = arith.cmpi ne, %13, %c0_i32_9 : i32
    scf.if %14 {
      %c0_10 = arith.constant 0 : index
      %c0_11 = arith.constant 0 : index
      %15 = vector.load %arg9[%c0_10, %c0_11] : memref<2x256xf32, #tpu.memory_space<vmem>>, vector<2x256xf32>
      %c0_12 = arith.constant 0 : index
      %c0_13 = arith.constant 0 : index
      %16 = vector.load %arg4[%c0_12, %c0_13] : memref<1x256xf32, #tpu.memory_space<vmem>>, vector<1x256xf32>
      %17 = vector.broadcast %16 : vector<1x256xf32> to vector<2x256xf32>
      %18 = arith.mulf %15, %17 : vector<2x256xf32>
      %c0_14 = arith.constant 0 : index
      %c0_15 = arith.constant 0 : index
      %19 = vector.load %arg5[%c0_14, %c0_15] : memref<1x256xf32, #tpu.memory_space<vmem>>, vector<1x256xf32>
      %20 = vector.broadcast %19 : vector<1x256xf32> to vector<2x256xf32>
      %21 = arith.addf %18, %20 : vector<2x256xf32>
      %cst_16 = arith.constant 0.000000e+00 : f32
      %22 = vector.broadcast %cst_16 : f32 to vector<2x256xf32>
      %23 = arith.maximumf %21, %22 : vector<2x256xf32>
      %24 = arith.truncf %23 : vector<2x256xf32> to vector<2x256xbf16>
      %c0_17 = arith.constant 0 : index
      %c0_18 = arith.constant 0 : index
      %25 = vector.load %arg6[%c0_17, %c0_18] : memref<256x128xbf16, #tpu.memory_space<vmem>>, vector<256x128xbf16>
      %cst_19 = arith.constant dense<0.000000e+00> : vector<2x128xf32>
      %26 = tpu.matmul %24, %25, %cst_19 {dimension_numbers = #tpu.dot_dimension_numbers<[1], [0], [0], [1], [0, 0, 1, 1], [], []>} : vector<2x256xbf16>, vector<256x128xbf16>, vector<2x128xf32> -> vector<2x128xf32>
      %c0_20 = arith.constant 0 : index
      %c0_21 = arith.constant 0 : index
      %27 = vector.load %arg7[%c0_20, %c0_21] : memref<1x128xf32, #tpu.memory_space<vmem>>, vector<1x128xf32>
      %cst_22 = arith.constant 5.000000e-01 : f32
      %28 = vector.broadcast %cst_22 : f32 to vector<1x128xf32>
      %29 = arith.mulf %28, %27 : vector<1x128xf32>
      %30 = vector.broadcast %29 : vector<1x128xf32> to vector<2x128xf32>
      %31 = arith.addf %26, %30 : vector<2x128xf32>
      %c0_23 = arith.constant 0 : index
      %c0_24 = arith.constant 0 : index
      %c0_25 = arith.constant 0 : index
      %32 = vector.load %arg8[%c0_23, %c0_24, %c0_25] : memref<1x2x128xf32, #tpu.memory_space<vmem>>, vector<1x2x128xf32>
      %33 = vector.shape_cast %32 : vector<1x2x128xf32> to vector<2x128xf32>
      %34 = vector.shape_cast %31 : vector<2x128xf32> to vector<1x2x128xf32>
      tpu.vector_store %arg8[%c0_23, %c0_24, %c0_25], %34 {strides = array<i32>} : memref<1x2x128xf32, #tpu.memory_space<vmem>>, vector<1x2x128xf32>,
    } else {
    }
    return
  }
  func.func @transform_0(%arg0: i32, %arg1: i32) -> (i32, i32) {
    %c0_i32 = arith.constant 0 : i32
    %c0_i32_0 = arith.constant 0 : i32
    return %c0_i32, %arg1 : i32, i32
  }
  func.func @transform_1(%arg0: i32, %arg1: i32) -> (i32, i32) {
    %c0_i32 = arith.constant 0 : i32
    return %arg1, %arg0 : i32, i32
  }
  func.func @transform_2(%arg0: i32, %arg1: i32) -> (i32, i32) {
    %c0_i32 = arith.constant 0 : i32
    %c0_i32_0 = arith.constant 0 : i32
    return %c0_i32, %arg0 : i32, i32
  }
  func.func @transform_3(%arg0: i32, %arg1: i32) -> (i32, i32) {
    %c0_i32 = arith.constant 0 : i32
    %c0_i32_0 = arith.constant 0 : i32
    return %c0_i32, %arg0 : i32, i32
  }
  func.func @transform_4(%arg0: i32, %arg1: i32) -> (i32, i32) {
    %c0_i32 = arith.constant 0 : i32
    %c0_i32_0 = arith.constant 0 : i32
    return %arg0, %c0_i32 : i32, i32
  }
  func.func @transform_5(%arg0: i32, %arg1: i32) -> (i32, i32) {
    %c0_i32 = arith.constant 0 : i32
    %c0_i32_0 = arith.constant 0 : i32
    %c0_i32_1 = arith.constant 0 : i32
    return %c0_i32, %c0_i32_0 : i32, i32
  }
  func.func @transform_6(%arg0: i32, %arg1: i32) -> (i32, i32, i32) {
    %c0_i32 = arith.constant 0 : i32
    %c0_i32_0 = arith.constant 0 : i32
    %c0_i32_1 = arith.constant 0 : i32
    return %arg0, %c0_i32, %c0_i32_0 : i32, i32, i32
  }
}

</mosaic_0001>

<bundles_post_ra>
// kernel: tpu_custom_call.1
= control target key start
LH: loop header
LB: loop body
LE: loop exit
PB: predicated region body
PF: predicated region fallthrough
CT: control target
= control target key end

     0   :  { %s2004_s0 = inlined_call_operand.hbm [shape: f32[2,1024], index: 0, kind: input, shape index: {}]   ;;  %s2005_s1 = inlined_call_operand.hbm [shape: s8[1024,512], index: 1, kind: input, shape index: {}]   ;;  %s2006_s2 = inlined_call_operand.hbm [shape: f32[1,512], index: 2, kind: input, shape index: {}]   ;;  %s2007_s3 = inlined_call_operand.vmem [shape: f32[1,512], index: 3, kind: input, shape index: {}]   ;;  %s2008_s4 = inlined_call_operand.hbm [shape: bf16[512,128], index: 4, kind: input, shape index: {}]   ;;  %s2009_s5 = inlined_call_operand.vmem [shape: f32[1,128], index: 5, kind: input, shape index: {}]   ;;  %s2010_s6 = inlined_call_operand.hbm [shape: f32[2,2,128], index: 6, kind: output, shape index: {}]  }
   0x1   :  { %2019 = sst [smem:[#allocation20_spill]] %s2005_s1 }
   0x2   :  { %11 = vsyncpa [#allocation4], 0 }
   0x3   :  { %12 = vsyncpa [#allocation7], 0 }
   0x4   :  { %14 = vsyncpa [#allocation7 + $0x1], 0 }
   0x5   :  { %15 = vsyncpa [#allocation10], 0 }
   0x6   :  { %17 = vsyncpa [#allocation10 + $0x1], 0 }
   0x7   :  { %18 = vsyncpa [#allocation5], 0 }
   0x8   :  { %20 = vsyncpa [#allocation5 + $0x1], 0  ;;  %s1654_s21 = smov 0   ;;  %s1656_s22 = smov 0  }
   0x9   :  { %s1658_s23 = smov 0   ;;  %s1660_s24 = smov 0  }
   0xa   :  { %s1662_s25 = smov 0   ;;  %s1664_s26 = smov 0  }
   0xb LB: > { %2020 = sst [smem:[#allocation16_spill]] %s1593_s23  ;;  %s38_s27 = sadd.s32 1, %s1601_s25  ;;  %s1605_s26 = sphi %s1664_s26, %s26_s26   ;;  %s1601_s25 = sphi %s1662_s25, %s2045_s25   ;;  %s1597_s24 = sphi %s1660_s24, %s2044_s24   ;;  %s1593_s23 = sphi %s1658_s23, %s2040_s23   ;;  %s1589_s22 = sphi %s1656_s22, %s2043_s22   ;;  %s1585_s21 = sphi %s1654_s21, %s2042_s21  }
   0xc   : > { %2021 = sst [smem:[#allocation17_spill]] %s1605_s26  ;;  %s73_s28 = sadd.s32 1, %s1593_s23 }
   0xd   : > { %p40_p0 = scmp.ge.s32.totalorder %s38_s27, 2  ;;  %p80_p1 = scmp.ne.s32.totalorder %s1593_s23, %s1589_s22 }
   0xe   : > { %p81_p2 = scmp.eq.s32.totalorder %s1605_s26, 0  ;;  %p1330_p5 = scmp.lt.s32.totalorder %s1605_s26, 2 }
   0xf   : > { %s2047_s27 = smov (%p40_p0, %s38_s27), 0  ;;  %s252_s30 = sand.u32 1, %s1605_s26  }
  0x10   : > { %2022 = sst [smem:[#allocation18_spill]] %s2047_s27  ;;  %p82_p4 = por %p81_p2, %p80_p1 }
  0x11   : > { %s69_s29 = ssub.s32 %s1601_s25, %s2047_s27  ;;  %s1700_s7 = sand.u32 1, %s1593_s23  }
  0x12   : > { %p71_p6 = scmp.eq.s32.totalorder %s69_s29, 0  ;;  %s1274_s8 = sshll.u32 %s1601_s25, 8 }
  0x13   : > { %s1238_s10 = sshll.u32 %s1700_s7, 9  ;;  %s2024_s1 = sld [smem:[#allocation20_spill]] }
  0x14   : > { %s1704_s9 = scalar_select %p71_p6, %s1593_s23, %s73_s28  }
  0x15   : > { %p1710_p7 = pnand %p1330_p5, %p82_p4  ;;  %s256_s15 = scalar_lea.vmem [#allocation6], %s1238_s10 }
  0x16   : > { %2023 = sst [smem:[#allocation19_spill]] %s1704_s9  ;;  %s266_s16 = sshll.u32 %s256_s15, 4  ;;  %s267_s16 = int_to_ptr.vmem [resolvable:$true] %s266_s16 }
  0x17   : > { %s1714_s17 = scalar_lea.sflag [#allocation7], %s252_s30  ;;  %p2017_p8 = pneg %p1710_p7 }
  0x18   : > { %s1420_s18 = scalar_lea.vmem %s267_s16, 8192  ;;  %s1607_s19 = smov [#allocation6]  }
  0x19   : > { %s265_s13 = scalar_lea.hbm %s2024_s1, %s1274_s8  ;;  %p1421_p9 = scmp.ne.s32.totalorder %s267_s16, %s1420_s18 }
  0x1a   : > { %s1425_s20 = sshll.u32 %s1607_s19, 4  ;;  %s1426_s20 = int_to_ptr.vmem [resolvable:$false] %s1425_s20 }
  0x1b   : > { %p1423_p10 = pnand %p1421_p9, %p2017_p8  ;;  %s1427_s28 = scalar_lea.vmem %s1426_s20, 16384 }
  0x1c   : > { %p1428_p12 = scmp.lt.s32.totalorder %s267_s16, %s1426_s20  ;;  %p1429_p13 = scmp.lt.s32.totalorder %s1427_s28, %s1420_s18 }
  0x1d   : > { %p1424_p11 = pneg %p1423_p10 }
  0x1e   : > { %p1430_p0 = por %p1429_p13, %p1428_p12 }
  0x20   : > { %p1431_p2 = pnand %p1430_p0, %p1424_p11 }
  0x22   : > { %1434 = shalt.err (!%p1431_p2)
}
  0x23   : > { %s1608_s29 = smov 512   ;;  %s1609_s30 = smov 256  }
  0x24   : > { %s1610_s8 = smov 16   ;;  %s1725_s10 = sadd.s32 4294967295, %s1605_s26  }
  0x25   : > { %1318 = dma.hbm_to_vmem [thread:$0]  (!%p1710_p7), %s265_s13, 8192, %s267_s16, %s1714_s17, %s1608_s29, %s1609_s30, %s1610_s8  }
  0x26   : > { %s1234_s11 = sadd.s32 4294967294, %s1605_s26   ;;  %p86_p4 = scmp.ne.s32.totalorder %s1589_s22, %s1585_s21 }
  0x27   : > { %p2016_p5 = scmp.eq.s32.totalorder %s1725_s10, 0  ;;  %p209_p6 = scmp.eq.s32.totalorder %s1725_s10, 1 }
  0x28   : > { %p215_p9 = scmp.eq.s32.totalorder %s1234_s11, 1  ;;  %p1235_p11 = scmp.ge.s32.totalorder %s1605_s26, 1 }
  0x29   : > { %p1734_p10 = por %p2016_p5, %p86_p4  ;;  %p1742_p12 = por %p209_p6, %p80_p1 }
  0x2a   : > { %p1746_p13 = por %p215_p9, %p86_p4  ;;  %p222_p0 = scmp.lt.s32.totalorder %s1605_s26, 3 }
  0x2b   : > { %s2026_s12 = scalar_select %p1734_p10, 1, 0 }
  0x2c   : > { %s2027_s13 = scalar_select %p1742_p12, 1, 0 }
  0x2d   : > { %s2028_s15 = scalar_select %p1746_p13, 1, 0 }
  0x2e   : > { %s1241_s16 = sshll.u32 %s1700_s7, 1  ;;  %p1752_p2 = pnand %p1235_p11, %p222_p0 }
  0x2f   : > { %s1611_s19 = smov [#allocation3]   ;;  %s1275_s28 = sshll.u32 %s1601_s25, 5 }
  0x30   : > { %s238_s20 = sshll.u32 %s1611_s19, 4  ;;  %p1311_p1 = pneg %p1752_p2  ;;  %s1756_s20 = int_to_ptr.vmem [resolvable:$true] %s238_s20 }
  0x31   : > { %s286_s8 = scalar_lea.hbm %s2006_s2, %s1275_s28  ;;  %s280_s11 = scalar_lea.vmem [#allocation8], %s1241_s16 }
  0x32   : > { %s288_s1 = sshll.u32 %s280_s11, 4  ;;  %p1766_p4 = pnand %p1311_p1, %p2016_p5  ;;  %s289_s1 = int_to_ptr.vmem [resolvable:$true] %s288_s1 }
  0x33   : > { %s1448_s9 = scalar_lea.vmem %s289_s1, 32  ;;  %s1612_s19 = smov [#allocation8]  }
  0x34   : > { %p1449_p6 = scmp.ne.s32.totalorder %s289_s1, %s1448_s9  ;;  %s1453_s23 = sshll.u32 %s1612_s19, 4  ;;  %s1454_s23 = int_to_ptr.vmem [resolvable:$false] %s1453_s23 }
  0x35   : > { %s1455_s26 = scalar_lea.vmem %s1454_s23, 64  ;;  %p1456_p0 = scmp.lt.s32.totalorder %s289_s1, %s1454_s23 }
  0x36   : > { %p1451_p9 = pnand %p1449_p6, %p2017_p8  ;;  %p1457_p3 = scmp.lt.s32.totalorder %s1455_s26, %s1448_s9 }
  0x38   : > { %p1452_p11 = pneg %p1451_p9  ;;  %p1458_p13 = por %p1457_p3, %p1456_p0 }
  0x3a   : > { %p1459_p12 = pnand %p1458_p13, %p1452_p11 }
  0x3c   : > { %1462 = shalt.err (!%p1459_p12)
}
  0x3d   : > { %1321 = dma.hbm_to_vmem [thread:$0]  (!%p1710_p7), %s286_s8, 32, %s289_s1, %s1714_s17  }
  0x3e   : > { %p1465_p1 = pneg %p1766_p4  ;;  %s1474_s16 = scalar_lea.vmem %s1756_s20, 256 }
  0x3f   : > { %p1475_p6 = scmp.ne.s32.totalorder %s1756_s20, %s1474_s16  ;;  %p1482_p8 = scmp.lt.s32.totalorder %s1756_s20, %s1756_s20 }
  0x40   : > { %p1483_p10 = scmp.lt.s32.totalorder %s1474_s16, %s1474_s16 }
  0x41   : > { %p1477_p9 = pnand %p1475_p6, %p1465_p1 }
  0x42   : > { %p1484_p3 = por %p1483_p10, %p1482_p8 }
  0x43   : > { %p1478_p5 = pneg %p1477_p9 }
  0x45   : > { %p1485_p13 = pnand %p1484_p3, %p1478_p5 }
  0x47   : > { %1488 = shalt.err (!%p1485_p13)
}
  0x48   : > { %1314 = dma.hbm_to_vmem [thread:$0]  (!%p1766_p4), %s2004_s0, 256, %s1756_s20, [#allocation4]  }
  0x49   : > { %s1244_s1 = sshll.u32 %s1700_s7, 7  ;;  %s1276_s9 = sshll.u32 %s1601_s25, 11 }
  0x4a   : > { %s313_s29 = scalar_lea.hbm %s2008_s4, %s1276_s9  ;;  %s307_s30 = scalar_lea.vmem [#allocation9], %s1244_s1 }
  0x4b   : > { %s314_s8 = sshll.u32 %s307_s30, 4  ;;  %s304_s11 = scalar_lea.sflag [#allocation10], %s1700_s7  ;;  %s315_s8 = int_to_ptr.vmem [resolvable:$true] %s314_s8 }
  0x4c   : > { %s1502_s27 = scalar_lea.vmem %s315_s8, 2048  ;;  %p2031_p5 = pneg %p1710_p7 }
  0x4d   : > { %p1503_p8 = scmp.ne.s32.totalorder %s315_s8, %s1502_s27  ;;  %s1613_s19 = smov [#allocation9]  }
  0x4e   : > { %s1507_s16 = sshll.u32 %s1613_s19, 4  ;;  %s1508_s16 = int_to_ptr.vmem [resolvable:$false] %s1507_s16 }
  0x4f   : > { %p1505_p10 = pnand %p1503_p8, %p2031_p5  ;;  %s1509_s20 = scalar_lea.vmem %s1508_s16, 4096 }
  0x50   : > { %p1510_p4 = scmp.lt.s32.totalorder %s315_s8, %s1508_s16  ;;  %p1511_p11 = scmp.lt.s32.totalorder %s1509_s20, %s1502_s27 }
  0x51   : > { %p1506_p12 = pneg %p1505_p10 }
  0x52   : > { %p1512_p0 = por %p1511_p11, %p1510_p4 }
  0x54   : > { %p1513_p1 = pnand %p1512_p0, %p1506_p12 }
  0x56   : > { %1516 = shalt.err (!%p1513_p1)
}
  0x57   : > { %s1614_s23 = smov 64   ;;  %s1615_s26 = smov 4  }
  0x58   : > { %1324 = dma.hbm_to_vmem [thread:$0]  (!%p1710_p7), %s313_s29, 2048, %s315_s8, %s304_s11, %s1614_s23, %s1614_s23, %s1615_s26  }
  0x59   : > { %326 = sbr.rel (%p1752_p2) target bundleno = 673 (0x2a1), region = 44  ;;  %p2032_p6 = scmp.eq.s32.totalorder (!%p1752_p2), %s1725_s10, 0 }
  0x5e   : > { %1568 = dma.done.wait (%p2032_p6), [#allocation4], 256   ;;  %p2033_p9 = pmov %p2032_p6 }
  0x5f   : > { %s332_s7 = sand.u32 1, %s1725_s10   ;;  %s1807_s1 = sand.u32 1, %s1589_s22  }
  0x60   : > { %1570 = vsyncadd (%p2033_p9), [#allocation4], 4294967040  ;;  %s1249_s9 = sshll.u32 %s1807_s1, 9  ;;  %s333_s17 = scalar_lea.sflag [#allocation7], %s332_s7 }
  0x61   : > { %s1810_s14 = scalar_lea.vmem [#allocation6], %s1249_s9  ;;  %p2034_p7 = scmp.ne.s32.totalorder %s2026_s12, 0 }
  0x63   : > { %1572 = dma.done.wait (%p2034_p7), %s333_s17, 8224  }
  0x64   : > { %1574 = vsyncadd (%p2034_p7), %s333_s17, 4294959072  ;;  %s1250_s18 = sshll.u32 %s1807_s1, 1  ;;  %s1251_s28 = sshll.u32 %s1807_s1, 7 }
  0x65   : > { %s1820_s10 = scalar_lea.vmem [#allocation8], %s1250_s18  ;;  %s351_s29 = scalar_lea.sflag [#allocation10], %s1807_s1 }
  0x66   : > { %s1823_s30 = scalar_lea.vmem [#allocation9], %s1251_s28 }
  0x67   : > { %1576 = dma.done.wait (%p2034_p7), %s351_s29, 2048  }
  0x68   : > { %1578 = vsyncadd (%p2034_p7), %s351_s29, 4294965248  ;;  %v474_v0 = vld [vmem:[%s1810_s14 + $0x38] sm:$0xff]  ;;  %v473_v2 = vld [vmem:[%s1810_s14 + $0x30] sm:$0xff]  ;;  %v1616_v18 = vmov 1983009808   ;;  %v421_v20 = vlaneseq  ;;  %s1253_s12 = sshll.u32 %s1597_s24, 1 }
  0x69   : > { %v490_v1 = vld [vmem:[%s1810_s14 + $0xb8] sm:$0xff]  ;;  %v544_v3 = vunpack.c.l.s8.bf16 %v474_v0  ;;  %v546_v4 = vunpack.c.h.s8.bf16 %v474_v0  ;;  %v489_v7 = vld [vmem:[%s1810_s14 + $0xb0] sm:$0xff]  ;;  %v545_v8 = vunpack.c.h.s8.bf16 %v473_v2  ;;  %v472_v10 = vld [vmem:[%s1810_s14 + $0x28] sm:$0xff]  ;;  %v543_v12 = vunpack.c.l.s8.bf16 %v473_v2  ;;  %p402_p2 = scmp.lt.s32.totalorder %s1253_s12, 3  ;;  %s1271_s20 = sshll.u32 %s1597_s24, 5 }
  0x6a   : > { %v576_v5 = vunpack.c.l.s8.bf16 %v490_v1  ;;  %v578_v6 = vunpack.c.h.s8.bf16 %v490_v1  ;;  %v577_v9 = vunpack.c.h.s8.bf16 %v489_v7  ;;  %v488_v11 = vld [vmem:[%s1810_s14 + $0xa8] sm:$0xff]  ;;  %v575_v13 = vunpack.c.l.s8.bf16 %v489_v7  ;;  %v471_v16 = vld [vmem:[%s1810_s14 + $0x20] sm:$0xff]  ;;  %v470_v27 = vld [vmem:[%s1810_s14 + $0x18] sm:$0xff]  ;;  %s396_s23 = scalar_lea.vmem [#allocation11], %s1250_s18  ;;  %s1962_s17 = scalar_lea.hbm %s2010_s6, %s1271_s20 }
  0x6b   : > { %660 = vmatprep.subr.bf16.mxu0 %v546_v4  ;;  %v542_v14 = vunpack.c.h.s8.bf16 %v472_v10  ;;  %v574_v15 = vunpack.c.h.s8.bf16 %v488_v11  ;;  %v487_v17 = vld [vmem:[%s1810_s14 + $0xa0] sm:$0xff]  ;;  %v419_v19 = vunpack.c.l.s4 %v1616_v18  ;;  %v541_v21 = vunpack.c.h.s8.bf16 %v471_v16  ;;  %v486_v28 = vld [vmem:[%s1810_s14 + $0x98] sm:$0xff]  ;;  %v469_v33 = vld [vmem:[%s1810_s14 + $0x10] sm:$0xff]  ;;  %s2049_s12 = smov (!%p402_p2, %s1253_s12), 3  ;;  %s1086_s26 = sshll.u32 %s396_s23, 4  ;;  %s1087_s26 = int_to_ptr.vmem [resolvable:$true] %s1086_s26 }
  0x6c   : > { %701 = vmatprep.subr.bf16.mxu1 %v578_v6  ;;  %661 = vmatpush1.bf16.msra.mxu0 %v545_v8  ;;  %v573_v22 = vunpack.c.h.s8.bf16 %v487_v17  ;;  %v540_v23 = vunpack.c.l.s8.bf16 %v472_v10  ;;  %v572_v24 = vunpack.c.l.s8.bf16 %v488_v11  ;;  %v1837_v26 = vshrl.u32 %v421_v20, 7  ;;  %v485_v34 = vld [vmem:[%s1810_s14 + $0x90] sm:$0xff]  ;;  %v468_v43 = vld [vmem:[%s1810_s14 + $0x8] sm:$0xff]  ;;  %v467_v51 = vld [vmem:[%s1810_s14] sm:$0xff]  ;;  %s404_s27 = scalar_lea.vmem %s2007_s3, %s2049_s12  ;;  %s1517_s28 = scalar_lea.vmem %s1087_s26, 32 }
  0x6d   : > { %702 = vmatpush1.bf16.msra.mxu1 %v577_v9  ;;  %662 = vmatprep.subr.bf16.mxu0 %v544_v3  ;;  %v420_v25 = vunpack.c.0.s8 %v419_v19  ;;  %v539_v29 = vunpack.c.l.s8.bf16 %v471_v16  ;;  %v571_v30 = vunpack.c.l.s8.bf16 %v487_v17  ;;  %v538_v31 = vunpack.c.h.s8.bf16 %v470_v27  ;;  %v413_v36 = vld [vmem:[#allocation3] sm:$0xff]  ;;  %v484_v44 = vld [vmem:[%s1810_s14 + $0x88] sm:$0xff]  ;;  %v483_v52 = vld [vmem:[%s1810_s14 + $0x80] sm:$0xff]  ;;  %p1518_p3 = scmp.ne.s32.totalorder %s1087_s26, %s1517_s28  ;;  %p2035_p13 = scmp.ne.s32.totalorder %s2027_s13, 0 }
  0x6e   : > { %703 = vmatprep.subr.bf16.mxu1 %v576_v5  ;;  %v570_v32 = vunpack.c.h.s8.bf16 %v486_v28  ;;  %v537_v37 = vunpack.c.h.s8.bf16 %v469_v33  ;;  %v569_v38 = vunpack.c.h.s8.bf16 %v485_v34  ;;  %v536_v39 = vunpack.c.l.s8.bf16 %v470_v27  ;;  %v482_v58 = vld [vmem:[%s1810_s14 + $0x78] sm:$0xff]  ;;  %v481_v62 = vld [vmem:[%s1810_s14 + $0x70] sm:$0xff]  ;;  %v480_v8 = vld [vmem:[%s1810_s14 + $0x68] sm:$0xff]  ;;  %s1618_s24 = smov [#allocation11]  }
  0x6f   : > { %v1844_v35 = vsub.s32 %v420_v25, %v1837_v26  ;;  %v568_v40 = vunpack.c.l.s8.bf16 %v486_v28  ;;  %v417_v42 = vcombine.high %v413_v36, %v413_v36  ;;  %v535_v47 = vunpack.c.l.s8.bf16 %v469_v33  ;;  %v498_v59 = vld [vmem:[%s1810_s14 + $0xf8] sm:$0xff]  ;;  %v497_v63 = vld [vmem:[%s1810_s14 + $0xf0] sm:$0xff]  ;;  %v496_v9 = vld [vmem:[%s1810_s14 + $0xe8] sm:$0xff]  ;;  %p1519_p8 = pnand %p1518_p3, %p2035_p13  ;;  %s1521_s18 = sshll.u32 %s1618_s24, 4  ;;  %s1522_s18 = int_to_ptr.vmem [resolvable:$false] %s1521_s18 }
  0x70   : > { %663 = vmatpush1.bf16.msra.mxu0 %v543_v12  ;;  %v567_v48 = vunpack.c.l.s8.bf16 %v485_v34  ;;  %v534_v49 = vunpack.c.h.s8.bf16 %v468_v43  ;;  %v566_v50 = vunpack.c.h.s8.bf16 %v484_v44  ;;  %v533_v56 = vunpack.c.h.s8.bf16 %v467_v51  ;;  %v478_v20 = vld [vmem:[%s1810_s14 + $0x58] sm:$0xff]  ;;  %v477_v27 = vld [vmem:[%s1810_s14 + $0x50] sm:$0xff]  ;;  %v476_v33 = vld [vmem:[%s1810_s14 + $0x48] sm:$0xff]  ;;  %p1524_p10 = scmp.lt.s32.totalorder %s1087_s26, %s1522_s18 }
  0x71   : > { %704 = vmatpush1.bf16.msra.mxu1 %v575_v13  ;;  %664 = vmatprep.subr.bf16.mxu0 %v542_v14  ;;  %v1847_v41 = vrot.slane %v413_v36, %v1844_v35  ;;  %v1854_v46 = vrot.slane %v417_v42, %v1844_v35  ;;  %v565_v57 = vunpack.c.h.s8.bf16 %v483_v52  ;;  %v532_v60 = vunpack.c.l.s8.bf16 %v468_v43  ;;  %v479_v14 = vld [vmem:[%s1810_s14 + $0x60] sm:$0xff]  ;;  %v493_v28 = vld [vmem:[%s1810_s14 + $0xd0] sm:$0xff]  ;;  %v492_v34 = vld [vmem:[%s1810_s14 + $0xc8] sm:$0xff]  ;;  %p1520_p5 = pneg %p1519_p8 }
  0x72   : > { %705 = vmatprep.subr.bf16.mxu1 %v574_v15  ;;  %v564_v61 = vunpack.c.l.s8.bf16 %v484_v44  ;;  %v531_v0 = vunpack.c.l.s8.bf16 %v467_v51  ;;  %v563_v1 = vunpack.c.l.s8.bf16 %v483_v52  ;;  %v562_v2 = vunpack.c.h.s8.bf16 %v482_v58  ;;  %v495_v15 = vld [vmem:[%s1810_s14 + $0xe0] sm:$0xff]  ;;  %v414_v36 = vld [vmem:[#allocation3 + $0x8] sm:$0xff] }
  0x73   : > { %v432_v45 = vcombine.high %v1847_v41, %v1847_v41  ;;  %v433_v54 = vcombine.high %v1854_v46, %v1854_v46  ;;  %v594_v3 = vunpack.c.h.s8.bf16 %v498_v59  ;;  %v561_v4 = vunpack.c.h.s8.bf16 %v481_v62  ;;  %v475_v42 = vld [vmem:[%s1810_s14 + $0x40] sm:$0xff]  ;;  %v522_v51 = vld [vmem:[%s1810_s14 + $0x1b8] sm:$0xff] }
  0x74   : > { %665 = vmatpush1.bf16.msra.mxu0 %v541_v21  ;;  %v593_v5 = vunpack.c.h.s8.bf16 %v497_v63  ;;  %v560_v6 = vunpack.c.l.s8.bf16 %v482_v58  ;;  %v592_v7 = vunpack.c.l.s8.bf16 %v498_v59  ;;  %v559_v10 = vunpack.c.l.s8.bf16 %v481_v62  ;;  %v494_v21 = vld [vmem:[%s1810_s14 + $0xd8] sm:$0xff]  ;;  %v491_v43 = vld [vmem:[%s1810_s14 + $0xc0] sm:$0xff]  ;;  %v505_v58 = vld [vmem:[%s1810_s14 + $0x130] sm:$0xff] }
  0x75   : > { %706 = vmatpush1.bf16.msra.mxu1 %v573_v22  ;;  %666 = vmatprep.subr.bf16.mxu0 %v540_v23  ;;  %v460_v53 = vpack.c.bf16 %v432_v45, %v432_v45  ;;  %v462_v55 = vpack.c.bf16 %v433_v54, %v433_v54  ;;  %v591_v11 = vunpack.c.l.s8.bf16 %v497_v63  ;;  %v558_v12 = vunpack.c.h.s8.bf16 %v480_v8  ;;  %v521_v59 = vld [vmem:[%s1810_s14 + $0x1b0] sm:$0xff] }
  0x76   : > { %707 = vmatprep.subr.bf16.mxu1 %v572_v24  ;;  %v590_v13 = vunpack.c.h.s8.bf16 %v496_v9  ;;  %v557_v16 = vunpack.c.h.s8.bf16 %v479_v14  ;;  %v589_v17 = vunpack.c.h.s8.bf16 %v495_v15  ;;  %v556_v18 = vunpack.c.l.s8.bf16 %v480_v8 }
  0x77   : > { %692 = vmatprep.mubr.bf16.mxu0 %v460_v53  ;;  %733 = vmatprep.mubr.bf16.mxu1 %v462_v55  ;;  %v588_v19 = vunpack.c.l.s8.bf16 %v496_v9  ;;  %v555_v22 = vunpack.c.l.s8.bf16 %v479_v14  ;;  %v587_v23 = vunpack.c.l.s8.bf16 %v495_v15  ;;  %v554_v24 = vunpack.c.h.s8.bf16 %v478_v20 }
  0x78   : > { %667 = vmatpush1.bf16.msra.mxu0 %v539_v29  ;;  %v586_v25 = vunpack.c.h.s8.bf16 %v494_v21  ;;  %v553_v29 = vunpack.c.h.s8.bf16 %v477_v27  ;;  %v434_v44 = vcombine.high %v414_v36, %v414_v36  ;;  %v549_v45 = vunpack.c.h.s8.bf16 %v475_v42 }
  0x79   : > { %708 = vmatpush1.bf16.msra.mxu1 %v571_v30  ;;  %668 = vmatprep.subr.bf16.mxu0 %v538_v31  ;;  %v585_v30 = vunpack.c.h.s8.bf16 %v493_v28  ;;  %v552_v31 = vunpack.c.l.s8.bf16 %v478_v20  ;;  %v1879_v52 = vrot.slane %v414_v36, %v1844_v35  ;;  %v547_v54 = vunpack.c.l.s8.bf16 %v475_v42  ;;  %v499_v36 = vld [vmem:[%s1810_s14 + $0x100] sm:$0xff] }
  0x7a   : > { %709 = vmatprep.subr.bf16.mxu1 %v570_v32  ;;  %v584_v32 = vunpack.c.l.s8.bf16 %v494_v21  ;;  %v1882_v53 = vrot.slane %v434_v44, %v1844_v35  ;;  %v579_v55 = vunpack.c.l.s8.bf16 %v491_v43  ;;  %v459_v62 = vpack.c.bf16 %v1847_v41, %v1847_v41  ;;  %v530_v44 = vld [vmem:[%s1810_s14 + $0x1f8] sm:$0xff] }
  0x7b   : > { %v461_v63 = vpack.c.bf16 %v1854_v46, %v1854_v46  ;;  %v607_v41 = vunpack.c.l.s8.bf16 %v505_v58  ;;  %v639_v46 = vunpack.c.l.s8.bf16 %v521_v59 }
  0x7c   : > { %669 = vmatpush1.bf16.msra.mxu0 %v537_v37  ;;  %v551_v37 = vunpack.c.l.s8.bf16 %v477_v27 }
  0x7d   : > { %710 = vmatpush1.bf16.msra.mxu1 %v569_v38  ;;  %670 = vmatprep.subr.bf16.mxu0 %v536_v39  ;;  %v583_v38 = vunpack.c.l.s8.bf16 %v493_v28  ;;  %v550_v39 = vunpack.c.h.s8.bf16 %v476_v33 }
  0x7e   : > { %711 = vmatprep.subr.bf16.mxu1 %v568_v40  ;;  %v582_v40 = vunpack.c.h.s8.bf16 %v492_v34 }
  0x80   : > { %671 = vmatpush1.bf16.msra.mxu0 %v535_v47  ;;  %v581_v47 = vunpack.c.h.s8.bf16 %v491_v43  ;;  %v514_v43 = vld [vmem:[%s1810_s14 + $0x178] sm:$0xff] }
  0x81   : > { %712 = vmatpush1.bf16.msra.mxu1 %v567_v48  ;;  %672 = vmatprep.subr.bf16.mxu0 %v534_v49  ;;  %v548_v48 = vunpack.c.l.s8.bf16 %v476_v33  ;;  %v580_v49 = vunpack.c.l.s8.bf16 %v492_v34 }
  0x82   : > { %713 = vmatprep.subr.bf16.mxu1 %v566_v50  ;;  %v506_v50 = vld [vmem:[%s1810_s14 + $0x138] sm:$0xff] }
  0x84   : > { %673 = vmatpush1.bf16.msra.mxu0 %v533_v56  ;;  %v610_v56 = vunpack.c.h.s8.bf16 %v506_v50 }
  0x85   : > { %714 = vmatpush1.bf16.msra.mxu1 %v565_v57  ;;  %674 = vmatprep.subr.bf16.mxu0 %v532_v60  ;;  %v642_v57 = vunpack.c.h.s8.bf16 %v522_v51  ;;  %v449_v60 = vcombine.high %v1879_v52, %v1879_v52 }
  0x86   : > { %715 = vmatprep.subr.bf16.mxu1 %v564_v61  ;;  %v450_v61 = vcombine.high %v1882_v53, %v1882_v53 }
  0x88   : > { %675 = vmatpush1.bf16.msra.mxu0 %v531_v0  ;;  %v609_v0 = vunpack.c.h.s8.bf16 %v505_v58  ;;  %v512_v58 = vld [vmem:[%s1810_s14 + $0x168] sm:$0xff] }
  0x89   : > { %716 = vmatpush1.bf16.msra.mxu1 %v563_v1  ;;  %676 = vmatprep.subr.bf16.mxu0 %v562_v2  ;;  %v641_v1 = vunpack.c.h.s8.bf16 %v521_v59  ;;  %v608_v2 = vunpack.c.l.s8.bf16 %v506_v50  ;;  %v513_v50 = vld [vmem:[%s1810_s14 + $0x170] sm:$0xff]  ;;  %v528_v59 = vld [vmem:[%s1810_s14 + $0x1e8] sm:$0xff] }
  0x8a   : > { %717 = vmatprep.subr.bf16.mxu1 %v594_v3  ;;  %v640_v3 = vunpack.c.l.s8.bf16 %v522_v51  ;;  %v529_v51 = vld [vmem:[%s1810_s14 + $0x1f0] sm:$0xff] }
  0x8c   : > { %677 = vmatpush2.bf16.msra.mxu0 %v561_v4  ;;  %v504_v4 = vld [vmem:[%s1810_s14 + $0x128] sm:$0xff] }
  0x8d   : > { %718 = vmatpush2.bf16.msra.mxu1 %v593_v5  ;;  %678 = vmatprep.subr.bf16.mxu0 %v560_v6  ;;  %v520_v5 = vld [vmem:[%s1810_s14 + $0x1a8] sm:$0xff]  ;;  %v464_v6 = vpack.c.bf16 %v449_v60, %v449_v60  ;;  %v606_v8 = vunpack.c.h.s8.bf16 %v504_v4  ;;  %v604_v14 = vunpack.c.l.s8.bf16 %v504_v4  ;;  %v623_v60 = vunpack.c.l.s8.bf16 %v513_v50 }
  0x8e   : > { %719 = vmatprep.subr.bf16.mxu1 %v592_v7  ;;  %v466_v7 = vpack.c.bf16 %v450_v61, %v450_v61  ;;  %v638_v9 = vunpack.c.h.s8.bf16 %v520_v5  ;;  %v636_v15 = vunpack.c.l.s8.bf16 %v520_v5  ;;  %v655_v61 = vunpack.c.l.s8.bf16 %v529_v51 }
  0x8f   : > { %v620_v4 = vunpack.c.l.s8.bf16 %v512_v58  ;;  %v652_v5 = vunpack.c.l.s8.bf16 %v528_v59 }
  0x90   : > { %679 = vmatpush2.bf16.msra.mxu0 %v559_v10  ;;  %v503_v10 = vld [vmem:[%s1810_s14 + $0x120] sm:$0xff] }
  0x91   : > { %720 = vmatpush2.bf16.msra.mxu1 %v591_v11  ;;  %680 = vmatprep.subr.bf16.mxu0 %v558_v12  ;;  %v519_v11 = vld [vmem:[%s1810_s14 + $0x1a0] sm:$0xff]  ;;  %v605_v12 = vunpack.c.h.s8.bf16 %v503_v10 }
  0x92   : > { %721 = vmatprep.subr.bf16.mxu1 %v590_v13  ;;  %v637_v13 = vunpack.c.h.s8.bf16 %v519_v11 }
  0x94   : > { %681 = vmatpush2.bf16.msra.mxu0 %v557_v16  ;;  %v502_v16 = vld [vmem:[%s1810_s14 + $0x118] sm:$0xff] }
  0x95   : > { %722 = vmatpush2.bf16.msra.mxu1 %v589_v17  ;;  %682 = vmatprep.subr.bf16.mxu0 %v556_v18  ;;  %v518_v17 = vld [vmem:[%s1810_s14 + $0x198] sm:$0xff]  ;;  %v603_v18 = vunpack.c.l.s8.bf16 %v503_v10  ;;  %v602_v20 = vunpack.c.h.s8.bf16 %v502_v16  ;;  %v600_v27 = vunpack.c.l.s8.bf16 %v502_v16  ;;  %v509_v10 = vld [vmem:[%s1810_s14 + $0x150] sm:$0xff]  ;;  %v508_v16 = vld [vmem:[%s1810_s14 + $0x148] sm:$0xff] }
  0x96   : > { %723 = vmatprep.subr.bf16.mxu1 %v588_v19  ;;  %v635_v19 = vunpack.c.l.s8.bf16 %v519_v11  ;;  %v634_v21 = vunpack.c.h.s8.bf16 %v518_v17  ;;  %v632_v28 = vunpack.c.l.s8.bf16 %v518_v17  ;;  %v525_v11 = vld [vmem:[%s1810_s14 + $0x1d0] sm:$0xff]  ;;  %v524_v17 = vld [vmem:[%s1810_s14 + $0x1c8] sm:$0xff] }
  0x98   : > { %683 = vmatpush2.bf16.msra.mxu0 %v555_v22  ;;  %v501_v22 = vld [vmem:[%s1810_s14 + $0x110] sm:$0xff] }
  0x99   : > { %724 = vmatpush2.bf16.msra.mxu1 %v587_v23  ;;  %684 = vmatprep.subr.bf16.mxu0 %v554_v24  ;;  %v517_v23 = vld [vmem:[%s1810_s14 + $0x190] sm:$0xff]  ;;  %v601_v24 = vunpack.c.h.s8.bf16 %v501_v22 }
  0x9a   : > { %725 = vmatprep.subr.bf16.mxu1 %v586_v25  ;;  %v633_v25 = vunpack.c.h.s8.bf16 %v517_v23 }
  0x9c   : > { %685 = vmatpush2.bf16.msra.mxu0 %v553_v29  ;;  %v500_v29 = vld [vmem:[%s1810_s14 + $0x108] sm:$0xff] }
  0x9d   : > { %726 = vmatpush2.bf16.msra.mxu1 %v585_v30  ;;  %686 = vmatprep.subr.bf16.mxu0 %v552_v31  ;;  %v516_v30 = vld [vmem:[%s1810_s14 + $0x188] sm:$0xff]  ;;  %v599_v31 = vunpack.c.l.s8.bf16 %v501_v22  ;;  %v598_v33 = vunpack.c.h.s8.bf16 %v500_v29  ;;  %v507_v22 = vld [vmem:[%s1810_s14 + $0x140] sm:$0xff] }
  0x9e   : > { %727 = vmatprep.subr.bf16.mxu1 %v584_v32  ;;  %v631_v32 = vunpack.c.l.s8.bf16 %v517_v23  ;;  %v630_v34 = vunpack.c.h.s8.bf16 %v516_v30  ;;  %v628_v42 = vunpack.c.l.s8.bf16 %v516_v30  ;;  %v523_v23 = vld [vmem:[%s1810_s14 + $0x1c0] sm:$0xff] }
  0x9f   : > { %v643_v30 = vunpack.c.l.s8.bf16 %v523_v23 }
  0xa0   : > { %687 = vmatpush2.bf16.msra.mxu0 %v551_v37  ;;  %v515_v37 = vld [vmem:[%s1810_s14 + $0x180] sm:$0xff] }
  0xa1   : > { %728 = vmatpush2.bf16.msra.mxu1 %v583_v38  ;;  %688 = vmatprep.subr.bf16.mxu0 %v550_v39  ;;  %v597_v38 = vunpack.c.h.s8.bf16 %v499_v36  ;;  %v629_v39 = vunpack.c.h.s8.bf16 %v515_v37 }
  0xa2   : > { %729 = vmatprep.subr.bf16.mxu1 %v582_v40  ;;  %v596_v40 = vunpack.c.l.s8.bf16 %v500_v29  ;;  %v611_v29 = vunpack.c.l.s8.bf16 %v507_v22 }
  0xa4   : > { %689 = vmatpush2.bf16.msra.mxu0 %v549_v45  ;;  %v595_v45 = vunpack.c.l.s8.bf16 %v499_v36  ;;  %v1617_v36 = vmov 0.0  }
  0xa5   : > { %730 = vmatpush2.bf16.msra.mxu1 %v581_v47  ;;  %690 = vmatprep.subr.bf16.mxu0 %v548_v48  ;;  %v627_v47 = vunpack.c.l.s8.bf16 %v515_v37  ;;  %v626_v48 = vunpack.c.h.s8.bf16 %v514_v43  ;;  %412 = vst [vmem:[#allocation2] sm:$0xf] %v1617_v36  ;;  %v1394_v37 = vld [vmem:[%s1823_s30 + $0x30] sm:$0xff]  }
  0xa6   : > { %731 = vmatprep.subr.bf16.mxu1 %v580_v49  ;;  %v658_v49 = vunpack.c.h.s8.bf16 %v530_v44 }
  0xa8   : > { %691 = vmatpush2.bf16.msra.mxu0 %v547_v54  ;;  %v625_v54 = vunpack.c.h.s8.bf16 %v513_v50  ;;  %v1406_v50 = vld [vmem:[%s1823_s30] sm:$0xff]  }
  0xa9   : > { %732 = vmatpush2.bf16.msra.mxu1 %v579_v55  ;;  %742 = vmatprep.subr.bf16.mxu0 %v610_v56  ;;  %v657_v55 = vunpack.c.h.s8.bf16 %v529_v51  ;;  %v624_v56 = vunpack.c.l.s8.bf16 %v514_v43  ;;  %v1400_v43 = vld [vmem:[%s1823_s30 + $0x18] sm:$0xff]  }
  0xaa   : > { %783 = vmatprep.subr.bf16.mxu1 %v642_v57  ;;  %v656_v57 = vunpack.c.l.s8.bf16 %v530_v44  ;;  %v1401_v44 = vld [vmem:[%s1823_s30 + $0x50] sm:$0xff]  }
  0xab   : > { %693 = vmatmul.mubr.bf16.vlgmr.msra.gmra.mxu0 %v459_v62  ;;  %v622_v62 = vunpack.c.h.s8.bf16 %v512_v58 }
  0xac   : > { %734 = vmatmul.mubr.bf16.vlgmr.msra.gmra.mxu1 %v461_v63  ;;  %743 = vmatpush1.bf16.msra.mxu0 %v609_v0  ;;  %v654_v63 = vunpack.c.h.s8.bf16 %v528_v59  ;;  %v511_v0 = vld [vmem:[%s1810_s14 + $0x160] sm:$0xff] }
  0xad   : > { %784 = vmatpush1.bf16.msra.mxu1 %v641_v1  ;;  %744 = vmatprep.subr.bf16.mxu0 %v608_v2  ;;  %v527_v1 = vld [vmem:[%s1810_s14 + $0x1e0] sm:$0xff]  ;;  %v621_v2 = vunpack.c.h.s8.bf16 %v511_v0 }
  0xae   : > { %785 = vmatprep.subr.bf16.mxu1 %v640_v3  ;;  %774 = vmatprep.mubr.bf16.mxu0 %v464_v6  ;;  %v653_v3 = vunpack.c.h.s8.bf16 %v527_v1  ;;  %v510_v6 = vld [vmem:[%s1810_s14 + $0x158] sm:$0xff] }
  0xaf   : > { %815 = vmatprep.mubr.bf16.mxu1 %v466_v7  ;;  %v526_v7 = vld [vmem:[%s1810_s14 + $0x1d8] sm:$0xff]  ;;  %s1073_s14 = scalar_lea.sflag [#allocation5], %s1807_s1 }
  0xb0   : > { %745 = vmatpush1.bf16.msra.mxu0 %v607_v41  ;;  %v619_v41 = vunpack.c.l.s8.bf16 %v511_v0 }
  0xb1   : > { %786 = vmatpush1.bf16.msra.mxu1 %v639_v46  ;;  %746 = vmatprep.subr.bf16.mxu0 %v606_v8  ;;  %v651_v46 = vunpack.c.l.s8.bf16 %v527_v1  ;;  %v618_v8 = vunpack.c.h.s8.bf16 %v510_v6 }
  0xb2   : > { %787 = vmatprep.subr.bf16.mxu1 %v638_v9  ;;  %v650_v9 = vunpack.c.h.s8.bf16 %v526_v7 }
  0xb4   : > { %747 = vmatpush1.bf16.msra.mxu0 %v605_v12  ;;  %v617_v12 = vunpack.c.h.s8.bf16 %v509_v10 }
  0xb5   : > { %788 = vmatpush1.bf16.msra.mxu1 %v637_v13  ;;  %748 = vmatprep.subr.bf16.mxu0 %v604_v14  ;;  %v649_v13 = vunpack.c.h.s8.bf16 %v525_v11  ;;  %v616_v14 = vunpack.c.l.s8.bf16 %v510_v6 }
  0xb6   : > { %789 = vmatprep.subr.bf16.mxu1 %v636_v15  ;;  %v648_v15 = vunpack.c.l.s8.bf16 %v526_v7 }
  0xb8   : > { %749 = vmatpush1.bf16.msra.mxu0 %v603_v18  ;;  %v615_v18 = vunpack.c.l.s8.bf16 %v509_v10 }
  0xb9   : > { %790 = vmatpush1.bf16.msra.mxu1 %v635_v19  ;;  %750 = vmatprep.subr.bf16.mxu0 %v602_v20  ;;  %v647_v19 = vunpack.c.l.s8.bf16 %v525_v11  ;;  %v614_v20 = vunpack.c.h.s8.bf16 %v508_v16  ;;  %v841_v11 = vld [vmem:[%s1820_s10] sm:$0x3]  ;;  %s1523_s10 = scalar_lea.vmem %s1522_s18, 64 }
  0xba   : > { %791 = vmatprep.subr.bf16.mxu1 %v634_v21  ;;  %v646_v21 = vunpack.c.h.s8.bf16 %v524_v17  ;;  %p1525_p12 = scmp.lt.s32.totalorder %s1523_s10, %s1517_s28 }
  0xbc   : > { %751 = vmatpush1.bf16.msra.mxu0 %v601_v24  ;;  %v613_v24 = vunpack.c.h.s8.bf16 %v507_v22  ;;  %p1526_p4 = por %p1525_p12, %p1524_p10 }
  0xbd   : > { %792 = vmatpush1.bf16.msra.mxu1 %v633_v25  ;;  %752 = vmatprep.subr.bf16.mxu0 %v600_v27  ;;  %v645_v25 = vunpack.c.h.s8.bf16 %v523_v23  ;;  %v612_v27 = vunpack.c.l.s8.bf16 %v508_v16 }
  0xbe   : > { %793 = vmatprep.subr.bf16.mxu1 %v632_v28  ;;  %v644_v28 = vunpack.c.l.s8.bf16 %v524_v17  ;;  %p1527_p11 = pnand %p1526_p4, %p1520_p5 }
  0xc0   : > { %753 = vmatpush1.bf16.msra.mxu0 %v599_v31  ;;  %v463_v31 = vpack.c.bf16 %v1879_v52, %v1879_v52  ;;  %v1393_v52 = vld [vmem:[%s1823_s30 + $0x70] sm:$0xff]  }
  0xc1   : > { %794 = vmatpush1.bf16.msra.mxu1 %v631_v32  ;;  %754 = vmatprep.subr.bf16.mxu0 %v598_v33  ;;  %v465_v32 = vpack.c.bf16 %v1882_v53, %v1882_v53  ;;  %v1391_v33 = vld [vmem:[%s1823_s30 + $0x78] sm:$0xff]   ;;  %v1395_v53 = vld [vmem:[%s1823_s30 + $0x68] sm:$0xff]  }
  0xc2   : > { %795 = vmatprep.subr.bf16.mxu1 %v630_v34  ;;  %v1392_v34 = vld [vmem:[%s1823_s30 + $0x38] sm:$0xff]  }
  0xc4   : > { %755 = vmatpush1.bf16.msra.mxu0 %v597_v38  ;;  %v1396_v38 = vld [vmem:[%s1823_s30 + $0x28] sm:$0xff]  }
  0xc5   : > { %796 = vmatpush1.bf16.msra.mxu1 %v629_v39  ;;  %756 = vmatprep.subr.bf16.mxu0 %v596_v40  ;;  %v1397_v39 = vld [vmem:[%s1823_s30 + $0x60] sm:$0xff]  }
  0xc6   : > { %797 = vmatprep.subr.bf16.mxu1 %v628_v42  ;;  %v1398_v40 = vld [vmem:[%s1823_s30 + $0x20] sm:$0xff]   ;;  %v1399_v42 = vld [vmem:[%s1823_s30 + $0x58] sm:$0xff]  }
  0xc8   : > { %757 = vmatpush1.bf16.msra.mxu0 %v595_v45  ;;  %v1402_v45 = vld [vmem:[%s1823_s30 + $0x10] sm:$0xff]  }
  0xc9   : > { %798 = vmatpush1.bf16.msra.mxu1 %v627_v47  ;;  %758 = vmatprep.subr.bf16.mxu0 %v626_v48  ;;  %v1403_v47 = vld [vmem:[%s1823_s30 + $0x48] sm:$0xff]  }
  0xca   : > { %799 = vmatprep.subr.bf16.mxu1 %v658_v49  ;;  %v1404_v48 = vld [vmem:[%s1823_s30 + $0x8] sm:$0xff]   ;;  %v1405_v49 = vld [vmem:[%s1823_s30 + $0x40] sm:$0xff]  }
  0xcc   : > { %759 = vmatpush2.bf16.msra.mxu0 %v625_v54 }
  0xcd   : > { %800 = vmatpush2.bf16.msra.mxu1 %v657_v55  ;;  %760 = vmatprep.subr.bf16.mxu0 %v624_v56 }
  0xce   : > { %801 = vmatprep.subr.bf16.mxu1 %v656_v57 }
  0xd0   : > { %761 = vmatpush2.bf16.msra.mxu0 %v623_v60 }
  0xd1   : > { %802 = vmatpush2.bf16.msra.mxu1 %v655_v61  ;;  %762 = vmatprep.subr.bf16.mxu0 %v622_v62 }
  0xd2   : > { %803 = vmatprep.subr.bf16.mxu1 %v654_v63 }
  0xd4   : > { %763 = vmatpush2.bf16.msra.mxu0 %v621_v2 }
  0xd5   : > { %804 = vmatpush2.bf16.msra.mxu1 %v653_v3  ;;  %764 = vmatprep.subr.bf16.mxu0 %v620_v4 }
  0xd6   : > { %805 = vmatprep.subr.bf16.mxu1 %v652_v5 }
  0xd8   : > { %765 = vmatpush2.bf16.msra.mxu0 %v619_v41 }
  0xd9   : > { %806 = vmatpush2.bf16.msra.mxu1 %v651_v46  ;;  %766 = vmatprep.subr.bf16.mxu0 %v618_v8  ;;  %v845_v46 = vsub.s32 0, %v1837_v26  ;;  %v849_v8 = vsub.s32 1, %v1837_v26 }
  0xda   : > { %807 = vmatprep.subr.bf16.mxu1 %v650_v9 }
  0xdb   : > { %v846_v16 = vrot.slane %v841_v11, %v845_v46  ;;  %v850_v17 = vrot.slane %v841_v11, %v849_v8 }
  0xdc   : > { %767 = vmatpush2.bf16.msra.mxu0 %v617_v12 }
  0xdd   : > { %808 = vmatpush2.bf16.msra.mxu1 %v649_v13  ;;  %768 = vmatprep.subr.bf16.mxu0 %v616_v14  ;;  %v659_v13 = vld [vmem:[#allocation2] sm:$0xf] }
  0xde   : > { %809 = vmatprep.subr.bf16.mxu1 %v648_v15  ;;  %v861_v14 = vld [vmem:[%s404_s27] sm:$0x3] }
  0xe0   : > { %769 = vmatpush2.bf16.msra.mxu0 %v615_v18 }
  0xe1   : > { %810 = vmatpush2.bf16.msra.mxu1 %v647_v19  ;;  %770 = vmatprep.subr.bf16.mxu0 %v614_v20  ;;  %v866_v19 = vrot.slane %v861_v14, %v845_v46  ;;  %v870_v20 = vrot.slane %v861_v14, %v849_v8 }
  0xe2   : > { %811 = vmatprep.subr.bf16.mxu1 %v646_v21  ;;  %v851_v21 = vcombine.low %v846_v16, %v850_v17 }
  0xe3   : > { %v871_v22 = vcombine.low %v866_v19, %v870_v20 }
  0xe4   : > { %771 = vmatpush2.bf16.msra.mxu0 %v613_v24  ;;  %v858_v23 = vrot.slane %v851_v21, %v1844_v35 }
  0xe5   : > { %812 = vmatpush2.bf16.msra.mxu1 %v645_v25  ;;  %772 = vmatprep.subr.bf16.mxu0 %v612_v27  ;;  %v878_v26 = vrot.slane %v871_v22, %v1844_v35 }
  0xe6   : > { %813 = vmatprep.subr.bf16.mxu1 %v644_v28 }
  0xe8   : > { %773 = vmatpush2.bf16.msra.mxu0 %v611_v29 }
  0xe9   : > { %814 = vmatpush2.bf16.msra.mxu1 %v643_v30  ;;  %1277 = vmatprep.subr.bf16.mxu0 %v1391_v33  ;;  %v927_v33 = vld [vmem:[%s2009_s5] sm:$0x1] }
  0xeb   : > { %775 = vmatmul.mubr.bf16.vlgmr.msra.gmra.mxu0 %v463_v31 }
  0xec   : > { %816 = vmatmul.mubr.bf16.vlgmr.msra.gmra.mxu1 %v465_v32  ;;  %1278 = vmatpush3.bf16.msra.mxu0 %v1392_v34  ;;  %v928_v34 = vmul.f32 0.5, %v927_v33 }
  0xed   : > { %1279 = vmatprep.subr.bf16.mxu0 %v1393_v52 }
  0xee   : > { %v933_v52 = vrot.slane %v928_v34, %v845_v46 }
  0xf0   : > { %1280 = vmatpush3.bf16.msra.mxu0 %v1394_v37 }
  0xf1   : > { %1281 = vmatprep.subr.bf16.mxu0 %v1395_v53 }
  0xf4   : > { %1282 = vmatpush3.bf16.msra.mxu0 %v1396_v38 }
  0xf5   : > { %1283 = vmatprep.subr.bf16.mxu0 %v1397_v39 }
  0xf8   : > { %1284 = vmatpush3.bf16.msra.mxu0 %v1398_v40 }
  0xf9   : > { %1285 = vmatprep.subr.bf16.mxu0 %v1399_v42 }
  0xfc   : > { %1286 = vmatpush3.bf16.msra.mxu0 %v1400_v43 }
  0xfd   : > { %1287 = vmatprep.subr.bf16.mxu0 %v1401_v44 }
 0x100   : > { %1288 = vmatpush3.bf16.msra.mxu0 %v1402_v45 }
 0x101   : > { %1289 = vmatprep.subr.bf16.mxu0 %v1403_v47 }
 0x104   : > { %1290 = vmatpush3.bf16.msra.mxu0 %v1404_v48 }
 0x105   : > { %1291 = vmatprep.subr.bf16.mxu0 %v1405_v49 }
 0x108   : > { %1292 = vmatpush3.bf16.msra.mxu0 %v1406_v50 }
 0x16b   : > { %v694_v51 = vpop.f32.mrf.mxu0 }
 0x16c   : > { %v735_v54 = vpop.f32.mrf.mxu1 }
 0x16d   : > { %v736_v55 = vadd.f32 %v735_v54, %v694_v51  ;;  %v696_v56 = vpop.f32.mrf.mxu0 }
 0x16e   : > { %v737_v57 = vpop.f32.mrf.mxu1 }
 0x16f   : > { %v698_v58 = vpop.f32.mrf.mxu0  ;;  %v738_v0 = vadd.f32 %v737_v57, %v696_v56 }
 0x170   : > { %v739_v59 = vpop.f32.mrf.mxu1 }
 0x171   : > { %v699_v60 = vpop.f32.mrf.mxu0 }
 0x172   : > { %v740_v61 = vpop.f32.mrf.mxu1 }
 0x1ab   : > { %v776_v62 = vpop.f32.mrf.mxu0 }
 0x1ac   : > { %v817_v63 = vpop.f32.mrf.mxu1  ;;  %v777_v1 = vadd.f32 %v776_v62, %v736_v55 }
 0x1ad   : > { %v778_v2 = vpop.f32.mrf.mxu0 }
 0x1ae   : > { %v819_v3 = vpop.f32.mrf.mxu1  ;;  %v779_v4 = vadd.f32 %v778_v2, %v738_v0  ;;  %v818_v7 = vadd.f32 %v817_v63, %v777_v1 }
 0x1af   : > { %v780_v5 = vpop.f32.mrf.mxu0 }
 0x1b0   : > { %v821_v6 = vpop.f32.mrf.mxu1  ;;  %v820_v41 = vadd.f32 %v819_v3, %v779_v4 }
 0x1b1   : > { %v781_v9 = vpop.f32.mrf.mxu0 }
 0x1b2   : > { %v822_v10 = vpop.f32.mrf.mxu1  ;;  %v826_v12 = vcombine.low %v818_v7, %v820_v41 }
 0x1b4   : > { %v833_v15 = vrot.slane %v826_v12, %v1844_v35 }
 0x1b6   : > { %v835_v18 = vadd.f32 %v833_v15, %v659_v13 }
 0x1b8   : > { %836 = vst [vmem:[#allocation2] sm:$0xf] %v835_v18 }
 0x1bf   : > { %v840_v24 = vld [vmem:[#allocation2] sm:$0xf] }
 0x1c0   : > { %v860_v25 = vmul.f32 %v858_v23, %v840_v24 }
 0x1c2   : > { %v880_v27 = vadd.f32 %v878_v26, %v860_v25 }
 0x1c4   : > { %v881_v28 = vmax.f32 %v880_v27, 0.0 }
 0x1c6   : > { %v889_v29 = vrot.slane %v881_v28, %v1844_v35 }
 0x1c8   : > { %v890_v30 = vcombine.high %v889_v29, %v889_v29  ;;  %v893_v32 = vpack.c.bf16 %v889_v29, %v889_v29 }
 0x1ca   : > { %v894_v31 = vpack.c.bf16 %v890_v30, %v890_v30 }
 0x1cc   : > { %1063 = vmatprep.mubr.bf16.mxu0 %v894_v31 }
 0x1cd   : > { %1064 = vmatmul.mubr.bf16.vlgmr.msra.gmra.mxu0 %v893_v32 }
 0x28d   : > { %v1293_v36 = vpop.f32.mrf.mxu0 }
 0x28f   : > { %v1294_v37 = vpop.f32.mrf.mxu0 }
 0x290   : > { %v1295_v35 = vadd.f32 %v1294_v37, %v1293_v36 }
 0x291   : > { %v1296_v53 = vpop.f32.mrf.mxu0 }
 0x292   : > { %v1066_v38 = vadd.f32 %v1295_v35, %v933_v52 }
 0x293   : > { %v1297_v39 = vpop.f32.mrf.mxu0 }
 0x294   : > { %1071 = vst [vmem:[%s396_s23] sm:$0x3] %v1066_v38 }
 0x295   : > { %1530 = shalt.err (!%p1527_p11)
}
 0x296   : > { %s1531_s29 = scalar_lea.hbm %s1962_s17, 32  ;;  %s1535_s12 = scalar_lea.hbm %s2010_s6, 64 }
 0x297   : > { %p1532_p0 = scmp.ne.s32.totalorder %s1962_s17, %s1531_s29  ;;  %p1536_p9 = scmp.lt.s32.totalorder %s1962_s17, %s2010_s6 }
 0x298   : > { %p1537_p7 = scmp.lt.s32.totalorder %s1535_s12, %s1531_s29 }
 0x299   : > { %p1533_p1 = pnand %p1532_p0, %p2035_p13 }
 0x29a   : > { %p1538_p2 = por %p1537_p7, %p1536_p9 }
 0x29b   : > { %p1534_p6 = pneg %p1533_p1 }
 0x29d   : > { %p1539_p3 = pnand %p1538_p2, %p1534_p6 }
 0x29f   : > { %1542 = shalt.err (!%p1539_p3)
}
 0x2a0   : > { %1309 = dma.vmem_to_hbm [thread:$0]  (%p2035_p13), %s1087_s26, 32, %s1962_s17, %s1073_s14  }
 0x2a1 PF: > { %s2036_s27 = sld [smem:[#allocation17_spill]]  ;;  %s1098_s19 = sand.u32 1, %s1585_s21  }
 0x2a2   : > { %p2037_p8 = scmp.ne.s32.totalorder %s2028_s15, 0  ;;  %s1099_s16 = scalar_lea.sflag [#allocation5], %s1098_s19 }
 0x2a7   : > { %p2038_p5 = scmp.ge.s32.totalorder %s2036_s27, 2 }
 0x2a9   : > { %p1326_p10 = pnand %p2038_p5, %p2037_p8 }
 0x2ab   : > { %p1327_p12 = pneg %p1326_p10 }
 0x2ad   : > { %1580 = dma.done.wait (%p1327_p12), %s1099_s16, 32  }
 0x2ae   : > { %1582 = vsyncadd (%p1327_p12), %s1099_s16, 4294967264  ;;  %s26_s26 = sadd.s32 1, %s2036_s27   ;;  %s2039_s20 = sld [smem:[#allocation16_spill]] }
 0x2af   : > { %p23_p4 = scmp.ge.s32.totalorder %s26_s26, 4   ;;  %s2040_s23 = sld [smem:[#allocation19_spill]] }
 0x2b0   : > { %s2041_s13 = sld [smem:[#allocation18_spill]]  ;;  %s2042_s21 = smov %s1589_s22 }
 0x2b1   : > { %s2044_s24 = smov %s1601_s25 }
 0x2b2   :  { %25 = sbr.rel (!%p23_p4) target bundleno = 11 (0xb), region = 130 }
 0x2b4   : > { %s2043_s22 = smov %s2039_s20 }
 0x2b6   : > { %s2045_s25 = smov %s2041_s13 }
 0x2b7   :  { %1104 = vsyncpa [#allocation4], 1 }
 0x2b8   :  { %1106 = vsyncpa [#allocation4 + $0x1], 1 }
 0x2b9   :  { %1107 = vsyncpa [#allocation7], 1 }
 0x2ba   :  { %1109 = vsyncpa [#allocation7 + $0x1], 1 }
 0x2bb   :  { %1110 = vsyncpa [#allocation10], 1 }
 0x2bc   :  { %1112 = vsyncpa [#allocation10 + $0x1], 1 }
 0x2bd   :  { %1113 = vsyncpa [#allocation5], 1 }
 0x2be   :  { %1115 = vsyncpa [#allocation5 + $0x1], 1 }

</bundles_post_ra>
